<compile_context>
chip_gen: v7x
topology: tpu7x:2x2x1
jax: 0.10.0
libtpu: 0.0.40
codegen_flags: <defaults>
</compile_context>

<pallas_src>
import jax
import jax.numpy as jnp
from jax.experimental import pallas as pl
from jax.experimental.pallas import tpu as pltpu


# ----------------------------------------------------------------------------
# Single fused kernel: encoder (time-sum folded into the MXU), K packed MLPs,
# flat suspect_graph_states assembly via slice stores.
# ----------------------------------------------------------------------------
def fused_kernel(x_ref, wenc_ref, benc_ref,
                 w1_ref, b1_ref, w2_ref, b2_ref, w3_ref, b3_ref,
                 enc_ref, sgs_ref):
    H = enc_ref.shape[1] // 2

    # Encoder: one MXU push. x is (Bt, T*F_raw); wenc is (T*F_raw, 2H) with the
    # per-timestep weight tiled T times, so the time reduction happens inside
    # the contraction.  benc already carries the T*bias term.
    enc = jnp.dot(x_ref[...], wenc_ref[...],
                  preferred_element_type=jnp.float32) + benc_ref[...]   # (Bt, 2H)
    enc_ref[...] = enc                                                  # 64-lane store

    sus = enc[:, H:]                                                    # (Bt, H)

    # K transforms as 3 lane-dense matmuls (layer 1 packed, layers 2/3 block-diag).
    h = jnp.dot(sus, w1_ref[...],
                preferred_element_type=jnp.float32) + b1_ref[...]       # (Bt, K*H)
    h = jnp.maximum(h, 0.0)
    h = jnp.dot(h, w2_ref[...],
                preferred_element_type=jnp.float32) + b2_ref[...]       # (Bt, K*H)
    h = jnp.maximum(h, 0.0)
    t = jnp.dot(h, w3_ref[...],
                preferred_element_type=jnp.float32) + b3_ref[...]       # (Bt, K*H)

    # suspect_graph_states (flat): [ suspect_state | transform_0 | ... | transform_{K-1} ]
    # Two in-place slice stores -- no concatenate, no cross-lane movement.
    sgs_ref[:, :H] = sus
    sgs_ref[:, H:] = t


# ----------------------------------------------------------------------------
# One-time parameter packing (outside the hot path).
# ----------------------------------------------------------------------------
def pack_params(params, target_dims, f_raw, seq_len):
    wc, bc = params["wc"], params["bc"]          # (F, H), (1, 1, H)
    ws, bs = params["ws"], params["bs"]
    H = wc.shape[-1]
    K = params["w1"].shape[0]
    td = jnp.asarray(target_dims)

    # Fold the target_dims gather into the encoder weights: zero rows for
    # unselected raw features, so raw x can be fed directly.
    wc_full = jnp.zeros((f_raw, H), jnp.float32).at[td].set(wc)
    ws_full = jnp.zeros((f_raw, H), jnp.float32).at[td].set(ws)
    wenc = jnp.concatenate([wc_full, ws_full], axis=1)                  # (F_raw, 2H)
    # Tile T times along rows so (B, T*F_raw) @ wenc_rep == sum_T x_t @ wenc.
    wenc_rep = jnp.tile(wenc, (seq_len, 1))                             # (T*F_raw, 2H)
    # Fold the T*bias term in as well: sum_T(xW + b) == x_flat @ W_rep + T*b.
    benc = jnp.float32(seq_len) * jnp.concatenate(
        [bc.reshape(1, H), bs.reshape(1, H)], axis=1)                   # (1, 2H)

    # Layer 1: pack K along the output (lane) axis -> (H, K*H).
    w1p = jnp.transpose(params["w1"], (1, 0, 2)).reshape(H, K * H)
    b1p = params["b1"].reshape(1, K * H)
    # Layers 2, 3: block-diagonal (K*H, K*H) so one matmul serves all K.
    w2bd = jax.scipy.linalg.block_diag(*[params["w2"][k] for k in range(K)])
    b2p = params["b2"].reshape(1, K * H)
    w3bd = jax.scipy.linalg.block_diag(*[params["w3"][k] for k in range(K)])
    b3p = params["b3"].reshape(1, K * H)

    return {"wenc": wenc_rep, "benc": benc,
            "w1": w1p, "b1": b1p, "w2": w2bd, "b2": b2p, "w3": w3bd, "b3": b3p}


# ----------------------------------------------------------------------------
# MainModel forward (featureNTL branch): a single pallas_call with a parallel
# batch grid (degenerates to one block at small B).
# ----------------------------------------------------------------------------
def main_model_forward(x, packed):
    B, T, F_raw = x.shape
    H = packed["wenc"].shape[1] // 2
    K = packed["w1"].shape[1] // H
    TF = T * F_raw

    # Free, contiguous reshape: fold the time axis into the contraction axis.
    x2d = x.reshape(B, TF).astype(jnp.float32)

    # Batch tile: keep the grid parallel-shardable when B is large (v7x has 2
    # TensorCores); at small B use a single full block (satisfies the (8,128)
    # "full dim" rule on the sublane axis).
    bt = 128 if (B % 128 == 0) else B
    grid = (B // bt,)

    flops = 2 * B * (TF * 2 * H + 3 * K * H * H)
    bytes_accessed = 4 * (x2d.size
                          + sum(int(v.size) for v in packed.values())
                          + B * 2 * H + B * (K + 1) * H)

    enc, sgs_flat = pl.pallas_call(
        fused_kernel,
        out_shape=(jax.ShapeDtypeStruct((B, 2 * H), jnp.float32),
                   jax.ShapeDtypeStruct((B, (K + 1) * H), jnp.float32)),
        grid_spec=pltpu.PrefetchScalarGridSpec(
            num_scalar_prefetch=0,
            grid=grid,
            in_specs=[
                pl.BlockSpec((bt, TF), lambda i: (i, 0)),
                pl.BlockSpec(packed["wenc"].shape, lambda i: (0, 0)),
                pl.BlockSpec(packed["benc"].shape, lambda i: (0, 0)),
                pl.BlockSpec(packed["w1"].shape, lambda i: (0, 0)),
                pl.BlockSpec(packed["b1"].shape, lambda i: (0, 0)),
                pl.BlockSpec(packed["w2"].shape, lambda i: (0, 0)),
                pl.BlockSpec(packed["b2"].shape, lambda i: (0, 0)),
                pl.BlockSpec(packed["w3"].shape, lambda i: (0, 0)),
                pl.BlockSpec(packed["b3"].shape, lambda i: (0, 0)),
            ],
            out_specs=(
                pl.BlockSpec((bt, 2 * H), lambda i: (i, 0)),
                pl.BlockSpec((bt, (K + 1) * H), lambda i: (i, 0)),
            ),
        ),
        compiler_params=pltpu.CompilerParams(
            dimension_semantics=("parallel",),
        ),
        cost_estimate=pl.CostEstimate(flops=flops, transcendentals=0,
                                      bytes_accessed=bytes_accessed),
    )(x2d, packed["wenc"], packed["benc"],
      packed["w1"], packed["b1"], packed["w2"], packed["b2"],
      packed["w3"], packed["b3"])

    # Lane-dense kernel outputs; slice/reshape in the wrapper (fused, cheap).
    context_graph_state = enc[:, :H]
    suspect_graph_state = enc[:, H:]
    suspect_graph_states = sgs_flat.reshape(B, K + 1, H)
    return context_graph_state, suspect_graph_state, suspect_graph_states


# ----------------------------------------------------------------------------
# Pure-JAX reference (unpacked params) for verification.
# ----------------------------------------------------------------------------
def reference_forward(x, target_dims, params):
    x = x[:, :, jnp.asarray(target_dims)].astype(jnp.float32)
    ctx = (jnp.einsum("btf,fh->bth", x, params["wc"]) + params["bc"]).sum(1)
    sus = (jnp.einsum("btf,fh->bth", x, params["ws"]) + params["bs"]).sum(1)
    states = [sus]
    K = params["w1"].shape[0]
    for k in range(K):
        h = jnp.maximum(sus @ params["w1"][k] + params["b1"][k], 0.0)
        h = jnp.maximum(h @ params["w2"][k] + params["b2"][k], 0.0)
        states.append(h @ params["w3"][k] + params["b3"][k])
    sgs = jnp.stack(states, axis=1)
    return ctx, sus, sgs


if __name__ == "__main__":
    # Small config consistent with the module:
    B, T = 2, 8                    # batch, sequence length
    F_raw = 6                      # raw feature dim
    target_dims = [0, 2, 3, 5]     # -> feature_dim = 4
    F = len(target_dims)
    H = 32                         # hidden_dim
    K = 4                          # n_transformations

    key = jax.random.PRNGKey(0)
    keys = jax.random.split(key, 9)

    x = jax.random.normal(keys[0], (B, T, F_raw), dtype=jnp.float32)

    params = {
        "wc": 0.1 * jax.random.normal(keys[1], (F, H), dtype=jnp.float32),
        "bc": 0.1 * jax.random.normal(keys[2], (1, 1, H), dtype=jnp.float32),
        "ws": 0.1 * jax.random.normal(keys[3], (F, H), dtype=jnp.float32),
        "bs": 0.1 * jax.random.normal(keys[4], (1, 1, H), dtype=jnp.float32),
        "w1": 0.1 * jax.random.normal(keys[5], (K, H, H), dtype=jnp.float32),
        "b1": jnp.zeros((K, 1, H), dtype=jnp.float32),
        "w2": 0.1 * jax.random.normal(keys[6], (K, H, H), dtype=jnp.float32),
        "b2": jnp.zeros((K, 1, H), dtype=jnp.float32),
        "w3": 0.1 * jax.random.normal(keys[7], (K, H, H), dtype=jnp.float32),
        "b3": jnp.zeros((K, 1, H), dtype=jnp.float32),
    }

    packed = jax.tree_util.tree_map(jax.block_until_ready,
                                    pack_params(params, target_dims, F_raw, T))

    ctx, sus, sgs = jax.block_until_ready(main_model_forward(x, packed))

    ctx_r, sus_r, sgs_r = reference_forward(x, target_dims, params)

    assert ctx.shape == (B, H) and sus.shape == (B, H) and sgs.shape == (B, K + 1, H)
    assert jnp.allclose(ctx, ctx_r, atol=1e-4, rtol=1e-4)
    assert jnp.allclose(sus, sus_r, atol=1e-4, rtol=1e-4)
    assert jnp.allclose(sgs, sgs_r, atol=1e-4, rtol=1e-4)

    print("KERNEL_OK")
</pallas_src>

<mosaic_0001>
module attributes {stable_mosaic.version = 11 : i64} {
  func.func @fused_kernel(%arg0: i32, %arg1: memref<2x48xf32, #tpu.memory_space<vmem>>, %arg2: memref<48x64xf32, #tpu.memory_space<vmem>>, %arg3: memref<1x64xf32, #tpu.memory_space<vmem>>, %arg4: memref<32x128xf32, #tpu.memory_space<vmem>>, %arg5: memref<1x128xf32, #tpu.memory_space<vmem>>, %arg6: memref<128x128xf32, #tpu.memory_space<vmem>>, %arg7: memref<1x128xf32, #tpu.memory_space<vmem>>, %arg8: memref<128x128xf32, #tpu.memory_space<vmem>>, %arg9: memref<1x128xf32, #tpu.memory_space<vmem>>, %arg10: memref<2x64xf32, #tpu.memory_space<vmem>>, %arg11: memref<2x160xf32, #tpu.memory_space<vmem>>) attributes {dimension_semantics = [#tpu.dimension_semantics<parallel>], iteration_bounds = array<i64: 1>, scalar_prefetch = 0 : i64, scratch_operands = 0 : i64, tpu.core_type = #tpu.core_type<tc>, window_params = [{transform_indices = @transform_0, window_bounds = array<i64: 2, 48>}, {pipeline_mode = #tpu.pipeline_mode<synchronous>, transform_indices = @transform_1, window_bounds = array<i64: 48, 64>}, {pipeline_mode = #tpu.pipeline_mode<synchronous>, transform_indices = @transform_2, window_bounds = array<i64: 1, 64>}, {pipeline_mode = #tpu.pipeline_mode<synchronous>, transform_indices = @transform_3, window_bounds = array<i64: 32, 128>}, {pipeline_mode = #tpu.pipeline_mode<synchronous>, transform_indices = @transform_4, window_bounds = array<i64: 1, 128>}, {pipeline_mode = #tpu.pipeline_mode<synchronous>, transform_indices = @transform_5, window_bounds = array<i64: 128, 128>}, {pipeline_mode = #tpu.pipeline_mode<synchronous>, transform_indices = @transform_6, window_bounds = array<i64: 1, 128>}, {pipeline_mode = #tpu.pipeline_mode<synchronous>, transform_indices = @transform_7, window_bounds = array<i64: 128, 128>}, {pipeline_mode = #tpu.pipeline_mode<synchronous>, transform_indices = @transform_8, window_bounds = array<i64: 1, 128>}, {transform_indices = @transform_9, window_bounds = array<i64: 2, 64>}, {transform_indices = @transform_10, window_bounds = array<i64: 2, 160>}]} {
    %c0 = arith.constant 0 : index
    %c0_0 = arith.constant 0 : index
    %0 = vector.load %arg1[%c0, %c0_0] : memref<2x48xf32, #tpu.memory_space<vmem>>, vector<2x48xf32>
    %c0_1 = arith.constant 0 : index
    %c0_2 = arith.constant 0 : index
    %1 = vector.load %arg2[%c0_1, %c0_2] : memref<48x64xf32, #tpu.memory_space<vmem>>, vector<48x64xf32>
    %cst = arith.constant dense<0.000000e+00> : vector<2x64xf32>
    %2 = tpu.matmul %0, %1, %cst {dimension_numbers = #tpu.dot_dimension_numbers<[1], [0], [0], [1], [0, 0, 1, 1], [], []>} : vector<2x48xf32>, vector<48x64xf32>, vector<2x64xf32> -> vector<2x64xf32>
    %c0_3 = arith.constant 0 : index
    %c0_4 = arith.constant 0 : index
    %3 = vector.load %arg3[%c0_3, %c0_4] : memref<1x64xf32, #tpu.memory_space<vmem>>, vector<1x64xf32>
    %4 = vector.broadcast %3 : vector<1x64xf32> to vector<2x64xf32>
    %5 = arith.addf %2, %4 : vector<2x64xf32>
    %c0_5 = arith.constant 0 : index
    %c0_6 = arith.constant 0 : index
    %6 = vector.load %arg10[%c0_5, %c0_6] : memref<2x64xf32, #tpu.memory_space<vmem>>, vector<2x64xf32>
    tpu.vector_store %arg10[%c0_5, %c0_6], %5 {strides = array<i32>} : memref<2x64xf32, #tpu.memory_space<vmem>>, vector<2x64xf32>,
    %7 = vector.extract_strided_slice %5 {offsets = [0, 32], sizes = [2, 32], strides = [1, 1]} : vector<2x64xf32> to vector<2x32xf32>
    %c0_7 = arith.constant 0 : index
    %c0_8 = arith.constant 0 : index
    %8 = vector.load %arg4[%c0_7, %c0_8] : memref<32x128xf32, #tpu.memory_space<vmem>>, vector<32x128xf32>
    %cst_9 = arith.constant dense<0.000000e+00> : vector<2x128xf32>
    %9 = tpu.matmul %7, %8, %cst_9 {dimension_numbers = #tpu.dot_dimension_numbers<[1], [0], [0], [1], [0, 0, 1, 1], [], []>} : vector<2x32xf32>, vector<32x128xf32>, vector<2x128xf32> -> vector<2x128xf32>
    %c0_10 = arith.constant 0 : index
    %c0_11 = arith.constant 0 : index
    %10 = vector.load %arg5[%c0_10, %c0_11] : memref<1x128xf32, #tpu.memory_space<vmem>>, vector<1x128xf32>
    %11 = vector.broadcast %10 : vector<1x128xf32> to vector<2x128xf32>
    %12 = arith.addf %9, %11 : vector<2x128xf32>
    %cst_12 = arith.constant 0.000000e+00 : f32
    %13 = vector.broadcast %cst_12 : f32 to vector<2x128xf32>
    %14 = arith.maximumf %12, %13 : vector<2x128xf32>
    %c0_13 = arith.constant 0 : index
    %c0_14 = arith.constant 0 : index
    %15 = vector.load %arg6[%c0_13, %c0_14] : memref<128x128xf32, #tpu.memory_space<vmem>>, vector<128x128xf32>
    %cst_15 = arith.constant dense<0.000000e+00> : vector<2x128xf32>
    %16 = tpu.matmul %14, %15, %cst_15 {dimension_numbers = #tpu.dot_dimension_numbers<[1], [0], [0], [1], [0, 0, 1, 1], [], []>} : vector<2x128xf32>, vector<128x128xf32>, vector<2x128xf32> -> vector<2x128xf32>
    %c0_16 = arith.constant 0 : index
    %c0_17 = arith.constant 0 : index
    %17 = vector.load %arg7[%c0_16, %c0_17] : memref<1x128xf32, #tpu.memory_space<vmem>>, vector<1x128xf32>
    %18 = vector.broadcast %17 : vector<1x128xf32> to vector<2x128xf32>
    %19 = arith.addf %16, %18 : vector<2x128xf32>
    %cst_18 = arith.constant 0.000000e+00 : f32
    %20 = vector.broadcast %cst_18 : f32 to vector<2x128xf32>
    %21 = arith.maximumf %19, %20 : vector<2x128xf32>
    %c0_19 = arith.constant 0 : index
    %c0_20 = arith.constant 0 : index
    %22 = vector.load %arg8[%c0_19, %c0_20] : memref<128x128xf32, #tpu.memory_space<vmem>>, vector<128x128xf32>
    %cst_21 = arith.constant dense<0.000000e+00> : vector<2x128xf32>
    %23 = tpu.matmul %21, %22, %cst_21 {dimension_numbers = #tpu.dot_dimension_numbers<[1], [0], [0], [1], [0, 0, 1, 1], [], []>} : vector<2x128xf32>, vector<128x128xf32>, vector<2x128xf32> -> vector<2x128xf32>
    %c0_22 = arith.constant 0 : index
    %c0_23 = arith.constant 0 : index
    %24 = vector.load %arg9[%c0_22, %c0_23] : memref<1x128xf32, #tpu.memory_space<vmem>>, vector<1x128xf32>
    %25 = vector.broadcast %24 : vector<1x128xf32> to vector<2x128xf32>
    %26 = arith.addf %23, %25 : vector<2x128xf32>
    %c0_24 = arith.constant 0 : index
    %c0_25 = arith.constant 0 : index
    %27 = vector.load %arg11[%c0_24, %c0_25] : memref<2x160xf32, #tpu.memory_space<vmem>>, vector<2x32xf32>
    tpu.vector_store %arg11[%c0_24, %c0_25], %7 {strides = array<i32>} : memref<2x160xf32, #tpu.memory_space<vmem>>, vector<2x32xf32>,
    %c0_26 = arith.constant 0 : index
    %c32 = arith.constant 32 : index
    %28 = vector.load %arg11[%c0_26, %c32] : memref<2x160xf32, #tpu.memory_space<vmem>>, vector<2x128xf32>
    tpu.vector_store %arg11[%c0_26, %c32], %26 {strides = array<i32>} : memref<2x160xf32, #tpu.memory_space<vmem>>, vector<2x128xf32>,
    return
  }
  func.func @transform_0(%arg0: i32) -> (i32, i32) {
    %c0_i32 = arith.constant 0 : i32
    %c0_i32_0 = arith.constant 0 : i32
    return %arg0, %c0_i32 : i32, i32
  }
  func.func @transform_1(%arg0: i32) -> (i32, i32) {
    %c0_i32 = arith.constant 0 : i32
    %c0_i32_0 = arith.constant 0 : i32
    %c0_i32_1 = arith.constant 0 : i32
    return %c0_i32, %c0_i32_0 : i32, i32
  }
  func.func @transform_2(%arg0: i32) -> (i32, i32) {
    %c0_i32 = arith.constant 0 : i32
    %c0_i32_0 = arith.constant 0 : i32
    %c0_i32_1 = arith.constant 0 : i32
    return %c0_i32, %c0_i32_0 : i32, i32
  }
  func.func @transform_3(%arg0: i32) -> (i32, i32) {
    %c0_i32 = arith.constant 0 : i32
    %c0_i32_0 = arith.constant 0 : i32
    %c0_i32_1 = arith.constant 0 : i32
    return %c0_i32, %c0_i32_0 : i32, i32
  }
  func.func @transform_4(%arg0: i32) -> (i32, i32) {
    %c0_i32 = arith.constant 0 : i32
    %c0_i32_0 = arith.constant 0 : i32
    %c0_i32_1 = arith.constant 0 : i32
    return %c0_i32, %c0_i32_0 : i32, i32
  }
  func.func @transform_5(%arg0: i32) -> (i32, i32) {
    %c0_i32 = arith.constant 0 : i32
    %c0_i32_0 = arith.constant 0 : i32
    %c0_i32_1 = arith.constant 0 : i32
    return %c0_i32, %c0_i32_0 : i32, i32
  }
  func.func @transform_6(%arg0: i32) -> (i32, i32) {
    %c0_i32 = arith.constant 0 : i32
    %c0_i32_0 = arith.constant 0 : i32
    %c0_i32_1 = arith.constant 0 : i32
    return %c0_i32, %c0_i32_0 : i32, i32
  }
  func.func @transform_7(%arg0: i32) -> (i32, i32) {
    %c0_i32 = arith.constant 0 : i32
    %c0_i32_0 = arith.constant 0 : i32
    %c0_i32_1 = arith.constant 0 : i32
    return %c0_i32, %c0_i32_0 : i32, i32
  }
  func.func @transform_8(%arg0: i32) -> (i32, i32) {
    %c0_i32 = arith.constant 0 : i32
    %c0_i32_0 = arith.constant 0 : i32
    %c0_i32_1 = arith.constant 0 : i32
    return %c0_i32, %c0_i32_0 : i32, i32
  }
  func.func @transform_9(%arg0: i32) -> (i32, i32) {
    %c0_i32 = arith.constant 0 : i32
    %c0_i32_0 = arith.constant 0 : i32
    return %arg0, %c0_i32 : i32, i32
  }
  func.func @transform_10(%arg0: i32) -> (i32, i32) {
    %c0_i32 = arith.constant 0 : i32
    %c0_i32_0 = arith.constant 0 : i32
    return %arg0, %c0_i32 : i32, i32
  }
}

</mosaic_0001>

<bundles_post_ra>
// kernel: tpu_custom_call.1
= control target key start
LH: loop header
LB: loop body
LE: loop exit
PB: predicated region body
PF: predicated region fallthrough
CT: control target
= control target key end

     0   :  { %16 = vsyncpa [#allocation3], 0  ;;  %s1126_s0 = inlined_call_operand.hbm [shape: f32[2,48], index: 0, kind: input, shape index: {}]   ;;  %s1127_s1 = inlined_call_operand.hbm [shape: f32[48,64], index: 1, kind: input, shape index: {}]   ;;  %s1128_s2 = inlined_call_operand.vmem [shape: f32[1,64], index: 2, kind: input, shape index: {}]   ;;  %s1129_s3 = inlined_call_operand.hbm [shape: f32[32,128], index: 3, kind: input, shape index: {}]   ;;  %s1130_s4 = inlined_call_operand.vmem [shape: f32[1,128], index: 4, kind: input, shape index: {}]   ;;  %s1131_s5 = inlined_call_operand.hbm [shape: f32[128,128], index: 5, kind: input, shape index: {}]   ;;  %s1132_s6 = inlined_call_operand.vmem [shape: f32[1,128], index: 6, kind: input, shape index: {}]   ;;  %s1133_s7 = inlined_call_operand.hbm [shape: f32[128,128], index: 7, kind: input, shape index: {}]   ;;  %s1134_s8 = inlined_call_operand.vmem [shape: f32[1,128], index: 8, kind: input, shape index: {}]   ;;  %s1135_s9 = inlined_call_operand.hbm [shape: f32[2,64], index: 9, kind: output, shape index: {0}]   ;;  %s1136_s10 = inlined_call_operand.hbm [shape: f32[2,160], index: 10, kind: output, shape index: {1}]  }
   0x1   :  { %17 = vsyncpa [#allocation6], 0 }
   0x2   :  { %18 = vsyncpa [#allocation9], 0 }
   0x3   :  { %19 = vsyncpa [#allocation4], 0 }
   0x4   :  { %20 = vsyncpa [#allocation13], 0  ;;  %s917_s13 = smov [#allocation5]   ;;  %s753_s17 = scalar_lea.hbm %s1127_s1, 768 }
   0x5   :  { %s36_s14 = sshll.u32 %s917_s13, 4  ;;  %p754_p0 = scmp.ne.s32.totalorder %s1127_s1, %s753_s17  ;;  %s37_s14 = int_to_ptr.vmem [resolvable:$true] %s36_s14 }
   0x6   :  { %p757_p1 = scmp.lt.u32.totalorder %s753_s17, %s1127_s1 }
   0x8   :  { %p759_p2 = pnand %p757_p1, %p754_p0 }
   0xa   :  { %762 = shalt.err (!%p759_p2)
}
   0xb   :  { %s763_s22 = scalar_lea.vmem %s37_s14, 768  ;;  %p768_p4 = scmp.lt.s32.totalorder %s37_s14, %s37_s14 }
   0xc   :  { %p764_p3 = scmp.ne.s32.totalorder %s37_s14, %s763_s22  ;;  %p769_p5 = scmp.lt.s32.totalorder %s763_s22, %s763_s22 }
   0xe   :  { %p770_p6 = por %p769_p5, %p768_p4 }
  0x10   :  { %p771_p7 = pnand %p770_p6, %p764_p3 }
  0x12   :  { %774 = shalt.err (!%p771_p7)
}
  0x13   :  { %s918_s23 = smov 128   ;;  %s919_s24 = smov 8  }
  0x14   :  { %42 = dma.hbm_to_vmem [thread:$0]  %s1127_s1, 768, %s37_s14, [#allocation6], %s918_s23, %s918_s23, %s919_s24  }
  0x15   :  { %s920_s27 = smov [#allocation8]   ;;  %s921_s29 = smov [#allocation2]  }
  0x16   :  { %s64_s28 = sshll.u32 %s920_s27, 4  ;;  %s27_s30 = sshll.u32 %s921_s29, 4  ;;  %s65_s28 = int_to_ptr.vmem [resolvable:$true] %s64_s28  ;;  %s28_s30 = int_to_ptr.vmem [resolvable:$true] %s27_s30 }
  0x17   :  { %s775_s13 = scalar_lea.hbm %s1131_s5, 2048 }
  0x18   :  { %p776_p8 = scmp.ne.s32.totalorder %s1131_s5, %s775_s13  ;;  %p779_p9 = scmp.lt.u32.totalorder %s775_s13, %s1131_s5 }
  0x1a   :  { %p781_p10 = pnand %p779_p9, %p776_p8 }
  0x1c   :  { %784 = shalt.err (!%p781_p10)
}
  0x1d   :  { %s785_s1 = scalar_lea.vmem %s65_s28, 2048  ;;  %p790_p12 = scmp.lt.s32.totalorder %s65_s28, %s65_s28 }
  0x1e   :  { %p786_p11 = scmp.ne.s32.totalorder %s65_s28, %s785_s1  ;;  %p791_p13 = scmp.lt.s32.totalorder %s785_s1, %s785_s1 }
  0x20   :  { %p792_p0 = por %p791_p13, %p790_p12 }
  0x22   :  { %p793_p1 = pnand %p792_p0, %p786_p11 }
  0x24   :  { %796 = shalt.err (!%p793_p1)
}
  0x25   :  { %70 = dma.hbm_to_vmem [thread:$0]  %s1131_s5, 2048, %s65_s28, [#allocation9], %s918_s23, %s918_s23, %s919_s24  }
  0x26   :  { %s797_s22 = scalar_lea.hbm %s1126_s0, 32 }
  0x27   :  { %p798_p2 = scmp.ne.s32.totalorder %s1126_s0, %s797_s22  ;;  %p801_p3 = scmp.lt.u32.totalorder %s797_s22, %s1126_s0 }
  0x29   :  { %p803_p4 = pnand %p801_p3, %p798_p2 }
  0x2b   :  { %806 = shalt.err (!%p803_p4)
}
  0x2c   :  { %s807_s11 = scalar_lea.vmem %s28_s30, 32  ;;  %p812_p6 = scmp.lt.s32.totalorder %s28_s30, %s28_s30 }
  0x2d   :  { %p808_p5 = scmp.ne.s32.totalorder %s28_s30, %s807_s11  ;;  %p813_p7 = scmp.lt.s32.totalorder %s807_s11, %s807_s11 }
  0x2f   :  { %p814_p8 = por %p813_p7, %p812_p6 }
  0x31   :  { %p815_p9 = pnand %p814_p8, %p808_p5 }
  0x33   :  { %818 = shalt.err (!%p815_p9)
}
  0x34   :  { %30 = dma.hbm_to_vmem [thread:$0]  %s1126_s0, 32, %s28_s30, [#allocation3]  }
  0x35   :  { %s922_s12 = smov [#allocation7]   ;;  %s923_s15 = smov [#allocation10]  }
  0x36   :  { %s50_s13 = sshll.u32 %s922_s12, 4  ;;  %s78_s16 = sshll.u32 %s923_s15, 4  ;;  %s51_s13 = int_to_ptr.vmem [resolvable:$true] %s50_s13  ;;  %s79_s16 = int_to_ptr.vmem [resolvable:$true] %s78_s16 }
  0x37   :  { %s819_s1 = scalar_lea.hbm %s1129_s3, 512 }
  0x38   :  { %p820_p10 = scmp.ne.s32.totalorder %s1129_s3, %s819_s1  ;;  %p823_p11 = scmp.lt.u32.totalorder %s819_s1, %s1129_s3 }
  0x3a   :  { %p825_p12 = pnand %p823_p11, %p820_p10 }
  0x3c   :  { %828 = shalt.err (!%p825_p12)
}
  0x3d   :  { %s829_s0 = scalar_lea.vmem %s51_s13, 512  ;;  %p834_p0 = scmp.lt.s32.totalorder %s51_s13, %s51_s13 }
  0x3e   :  { %p830_p13 = scmp.ne.s32.totalorder %s51_s13, %s829_s0  ;;  %p835_p1 = scmp.lt.s32.totalorder %s829_s0, %s829_s0 }
  0x40   :  { %p836_p2 = por %p835_p1, %p834_p0 }
  0x42   :  { %p837_p3 = pnand %p836_p2, %p830_p13 }
  0x44   :  { %840 = shalt.err (!%p837_p3)
}
  0x45   :  { %56 = dma.hbm_to_vmem [thread:$0]  %s1129_s3, 512, %s51_s13, [#allocation6], %s918_s23, %s918_s23, %s919_s24  }
  0x46   :  { %s841_s27 = scalar_lea.hbm %s1133_s7, 2048 }
  0x47   :  { %p842_p4 = scmp.ne.s32.totalorder %s1133_s7, %s841_s27  ;;  %p845_p5 = scmp.lt.u32.totalorder %s841_s27, %s1133_s7 }
  0x49   :  { %p847_p6 = pnand %p845_p5, %p842_p4 }
  0x4b   :  { %850 = shalt.err (!%p847_p6)
}
  0x4c   :  { %s851_s12 = scalar_lea.vmem %s79_s16, 2048  ;;  %p856_p8 = scmp.lt.s32.totalorder %s79_s16, %s79_s16 }
  0x4d   :  { %p852_p7 = scmp.ne.s32.totalorder %s79_s16, %s851_s12  ;;  %p857_p9 = scmp.lt.s32.totalorder %s851_s12, %s851_s12 }
  0x4f   :  { %p858_p10 = por %p857_p9, %p856_p8 }
  0x51   :  { %p859_p11 = pnand %p858_p10, %p852_p7 }
  0x53   :  { %862 = shalt.err (!%p859_p11)
}
  0x54   :  { %84 = dma.hbm_to_vmem [thread:$0]  %s1133_s7, 2048, %s79_s16, [#allocation9], %s918_s23, %s918_s23, %s919_s24  }
  0x55   :  { %907 = dma.done.wait [#allocation3], 32  }
  0x56   :  { %908 = vsyncadd [#allocation3], 4294967264 }
  0x57   :  { %909 = dma.done.wait [#allocation6], 1280  }
  0x58   :  { %910 = vsyncadd [#allocation6], 4294966016 }
  0x59   :  { %911 = dma.done.wait [#allocation9], 4096  }
  0x5a   :  { %912 = vsyncadd [#allocation9], 4294963200  ;;  %v924_v0 = vmov 0.0|0.0   ;;  %vm925_vm0 = vmmov 0   ;;  %v926_v1 = vmov 0.0   ;;  %v103_v2 = vld [vmem:[#allocation5] sm:$0xff]  ;;  %v470_v20 = vlaneseq }
  0x5b   :  { %675 = vmatprep.subr.bf16.mxu0 %v924_v0  ;;  %591 = vmatprep.mubr.msk.f32.mxu0 %vm925_vm0, %v926_v1  ;;  %v104_v3 = vld [vmem:[#allocation5 + $0x8] sm:$0xff]  ;;  %v105_v4 = vld [vmem:[#allocation5 + $0x10] sm:$0xff]  ;;  %v106_v6 = vld [vmem:[#allocation5 + $0x18] sm:$0xff]  ;;  %vm116_vm1 = vcmask 392192   ;;  %v927_v18 = vmov 1983009808  }
  0x5c   :  { %684 = vmatprep.subr.bf16.mxu1 %v924_v0  ;;  %602 = vmatprep.mubr.msk.f32.mxu1 %vm925_vm0, %v926_v1  ;;  %v676_v5 = vpack.c.bf16 %v104_v3, %v103_v2  ;;  %v679_v7 = vpack.c.bf16 %v106_v6, %v105_v4  ;;  %v107_v8 = vld [vmem:[#allocation5 + $0x20] sm:$0xff]  ;;  %v108_v9 = vld [vmem:[#allocation5 + $0x28] sm:$0xff]  ;;  %v102_v11 = vld [vmem:[#allocation2] sm:$0x3]  ;;  %v468_v19 = vunpack.c.l.s4 %v927_v18  ;;  %v471_v22 = vshrl.u32 %v470_v20, 7  ;;  %s928_s24 = smov 96  }
  0x5d   :  { %v682_v10 = vpack.c.bf16 %v108_v9, %v107_v8  ;;  %v192_v12 = vld [vmem:[#allocation7] sm:$0xff]  ;;  %v193_v13 = vld [vmem:[#allocation7 + $0x8] sm:$0xff]  ;;  %v194_v14 = vld [vmem:[#allocation7 + $0x10] sm:$0xff]  ;;  %vm190_vm2 = vcmask 517120   ;;  %vm206_vm3 = vcmask 261120   ;;  %vm477_vm4 = vcmask 254976  }
  0x5e   :  { %677 = vmatpush3.bf16.msra.mxu0 %v676_v5  ;;  %v685_v15 = vpack.c.bf16 %v193_v13, %v192_v12  ;;  %v195_v16 = vld [vmem:[#allocation7 + $0x18] sm:$0xff]  ;;  %v469_v21 = vunpack.c.0.s8 %v468_v19  ;;  %v527_v23 = vld [vmem:[%s1128_s2] ss:$0 sm:$0xff]  ;;  %v280_v29 = vld [vmem:[#allocation8] sm:$0xff]  ;;  %s929_s18 = smov [#allocation11]  }
  0x5f   :  { %678 = vmatprep.subr.bf16.mxu0 %v924_v0  ;;  %v688_v17 = vpack.c.bf16 %v195_v16, %v194_v14  ;;  %v281_v30 = vld [vmem:[#allocation8 + $0x8] sm:$0xff]  ;;  %v282_v32 = vld [vmem:[#allocation8 + $0x10] sm:$0xff]  ;;  %v283_v33 = vld [vmem:[#allocation8 + $0x18] sm:$0xff] }
  0x60   :  { %686 = vmatpush3.bf16.msra.mxu1 %v685_v15  ;;  %v1072_v24 = vsub.s32 %v469_v21, %v471_v22  ;;  %v691_v31 = vpack.c.bf16 %v281_v30, %v280_v29  ;;  %v694_v36 = vpack.c.bf16 %v283_v33, %v282_v32  ;;  %v284_v37 = vld [vmem:[#allocation8 + $0x20] sm:$0xff]  ;;  %v285_v38 = vld [vmem:[#allocation8 + $0x28] sm:$0xff]  ;;  %v286_v40 = vld [vmem:[#allocation8 + $0x30] sm:$0xff] }
  0x61   :  { %687 = vmatprep.subr.bf16.mxu1 %v924_v0  ;;  %v697_v39 = vpack.c.bf16 %v285_v38, %v284_v37  ;;  %v287_v41 = vld [vmem:[#allocation8 + $0x38] sm:$0xff]  ;;  %v288_v43 = vld [vmem:[#allocation8 + $0x40] sm:$0xff]  ;;  %v289_v44 = vld [vmem:[#allocation8 + $0x48] sm:$0xff] }
  0x62   :  { %680 = vmatpush3.bf16.msra.mxu0 %v679_v7  ;;  %v700_v42 = vpack.c.bf16 %v287_v41, %v286_v40  ;;  %v703_v45 = vpack.c.bf16 %v289_v44, %v288_v43  ;;  %v290_v46 = vld [vmem:[#allocation8 + $0x50] sm:$0xff]  ;;  %v291_v47 = vld [vmem:[#allocation8 + $0x58] sm:$0xff]  ;;  %v292_v49 = vld [vmem:[#allocation8 + $0x60] sm:$0xff] }
  0x63   :  { %681 = vmatprep.subr.bf16.mxu0 %v924_v0  ;;  %v706_v48 = vpack.c.bf16 %v291_v47, %v290_v46  ;;  %v293_v50 = vld [vmem:[#allocation8 + $0x68] sm:$0xff]  ;;  %v294_v52 = vld [vmem:[#allocation8 + $0x70] sm:$0xff]  ;;  %v295_v53 = vld [vmem:[#allocation8 + $0x78] sm:$0xff] }
  0x64   :  { %689 = vmatpush3.bf16.msra.mxu1 %v688_v17  ;;  %v709_v51 = vpack.c.bf16 %v293_v50, %v292_v49  ;;  %v712_v54 = vpack.c.bf16 %v295_v53, %v294_v52  ;;  %v374_v55 = vld [vmem:[#allocation10] sm:$0xff]  ;;  %v375_v56 = vld [vmem:[#allocation10 + $0x8] sm:$0xff]  ;;  %v376_v57 = vld [vmem:[#allocation10 + $0x10] sm:$0xff] }
  0x65   :  { %690 = vmatprep.subr.bf16.mxu1 %v924_v0  ;;  %v715_v58 = vpack.c.bf16 %v375_v56, %v374_v55  ;;  %v377_v59 = vld [vmem:[#allocation10 + $0x18] sm:$0xff]  ;;  %v378_v61 = vld [vmem:[#allocation10 + $0x20] sm:$0xff]  ;;  %v379_v62 = vld [vmem:[#allocation10 + $0x28] sm:$0xff] }
  0x66   :  { %683 = vmatpush3.bf16.msra.mxu0 %v682_v10  ;;  %v718_v60 = vpack.c.bf16 %v377_v59, %v376_v57  ;;  %v721_v63 = vpack.c.bf16 %v379_v62, %v378_v61  ;;  %v381_v2 = vld [vmem:[#allocation10 + $0x38] sm:$0xff]  ;;  %v382_v4 = vld [vmem:[#allocation10 + $0x40] sm:$0xff]  ;;  %v383_v5 = vld [vmem:[#allocation10 + $0x48] sm:$0xff] }
  0x67   :  { %714 = vmatprep.subr.bf16.mxu0 %v924_v0  ;;  %v727_v6 = vpack.c.bf16 %v383_v5, %v382_v4  ;;  %v384_v7 = vld [vmem:[#allocation10 + $0x50] sm:$0xff]  ;;  %v385_v8 = vld [vmem:[#allocation10 + $0x58] sm:$0xff]  ;;  %v386_v10 = vld [vmem:[#allocation10 + $0x60] sm:$0xff] }
  0x68   :  { %v730_v9 = vpack.c.bf16 %v385_v8, %v384_v7  ;;  %v529_v13 = vld [vmem:[%s1130_s4] ss:$0 sm:$0xff]  ;;  %v388_v18 = vld [vmem:[#allocation10 + $0x70] sm:$0xff]  ;;  %v389_v19 = vld [vmem:[#allocation10 + $0x78] sm:$0xff]  ;;  %s502_s4 = sshll.u32 %s929_s18, 4  ;;  %s503_s4 = int_to_ptr.vmem [resolvable:$true] %s502_s4 }
  0x69   :  { %592 = vmatmul.mubr.msk.f32.vlgmr.msra.gmra.mrb[0].mxu0 %vm116_vm1, %v102_v11  ;;  %v387_v11 = vld [vmem:[#allocation10 + $0x68] sm:$0xff]  ;;  %v736_v20 = vpack.c.bf16 %v389_v19, %v388_v18  ;;  %s863_s1 = scalar_lea.vmem %s503_s4, 32  ;;  %p868_p13 = scmp.lt.s32.totalorder %s503_s4, %s503_s4 }
  0x6a   :  { %672 = vmatprep.mubr.msk.f32.mxu0 %vm925_vm0, %v926_v1  ;;  %716 = vmatpush3.bf16.msra.mxu0 %v715_v58  ;;  %v733_v12 = vpack.c.bf16 %v387_v11, %v386_v10  ;;  %v531_v21 = vld [vmem:[%s1132_s6] ss:$0 sm:$0xff]  ;;  %p864_p12 = scmp.ne.s32.totalorder %s503_s4, %s863_s1  ;;  %p869_p0 = scmp.lt.s32.totalorder %s863_s1, %s863_s1 }
  0x6b   :  { %717 = vmatprep.subr.bf16.mxu0 %v924_v0 }
  0x6c   :  { %p870_p1 = por %p869_p0, %p868_p13 }
  0x6e   :  { %719 = vmatpush3.bf16.msra.mxu0 %v718_v60  ;;  %p871_p2 = pnand %p870_p1, %p864_p12 }
  0x6f   :  { %720 = vmatprep.subr.bf16.mxu0 %v924_v0 }
  0x72   :  { %722 = vmatpush3.bf16.msra.mxu0 %v721_v63 }
  0x73   :  { %723 = vmatprep.subr.bf16.mxu0 %v924_v0 }
 0x13c   :  { %v186_v25 = vpop.f32.mrb[0].mxu0 }
 0x13d   :  { %v187_v26 = vadd.f32 %v527_v23, %v186_v25  ;;  %v593_v27 = vpop.f32.mrb[1].mxu0 }
 0x13f   :  { %204 = vrot.lane.b32.xlu0 %v187_v26, %s928_s24  ;;  %v473_v28 = vrot.slane %v187_v26, %v1072_v24  ;;  %191 = vst.msk [vmem:[#allocation11] sm:$0x3] %vm190_vm2, %v187_v26 }
 0x141   :  { %474 = vrot.lane.b32.xlu1 %v473_v28, %s928_s24 }
 0x1b1   :  { %v205_v34 = vpop.permute.xlu0 %204 }
 0x1b2   :  { %603 = vmatmul.mubr.msk.f32.vlgmr.msra.gmra.mrb[0].mxu1 %vm206_vm3, %v205_v34 }
 0x1b3   :  { %v475_v35 = vpop.permute.xlu1 %474  ;;  %692 = vmatpush3.bf16.msra.mxu1 %v691_v31  ;;  %637 = vmatprep.mubr.msk.f32.mxu1 %vm925_vm0, %v926_v1  ;;  %v380_v1 = vld [vmem:[#allocation10 + $0x30] sm:$0xff] }
 0x1b4   :  { %478 = vst.msk [vmem:[#allocation12] sm:$0x3] %vm477_vm4, %v475_v35  ;;  %693 = vmatprep.subr.bf16.mxu1 %v924_v0  ;;  %v724_v3 = vpack.c.bf16 %v381_v2, %v380_v1 }
 0x1b6   :  { %725 = vmatpush3.bf16.msra.mxu0 %v724_v3 }
 0x1b7   :  { %695 = vmatpush3.bf16.msra.mxu1 %v694_v36  ;;  %726 = vmatprep.subr.bf16.mxu0 %v924_v0 }
 0x1b8   :  { %696 = vmatprep.subr.bf16.mxu1 %v924_v0 }
 0x1ba   :  { %728 = vmatpush3.bf16.msra.mxu0 %v727_v6 }
 0x1bb   :  { %698 = vmatpush3.bf16.msra.mxu1 %v697_v39  ;;  %729 = vmatprep.subr.bf16.mxu0 %v924_v0 }
 0x1bc   :  { %699 = vmatprep.subr.bf16.mxu1 %v924_v0 }
 0x1be   :  { %731 = vmatpush3.bf16.msra.mxu0 %v730_v9 }
 0x1bf   :  { %701 = vmatpush3.bf16.msra.mxu1 %v700_v42  ;;  %732 = vmatprep.subr.bf16.mxu0 %v924_v0 }
 0x1c0   :  { %702 = vmatprep.subr.bf16.mxu1 %v924_v0 }
 0x1c2   :  { %734 = vmatpush3.bf16.msra.mxu0 %v733_v12 }
 0x1c3   :  { %704 = vmatpush3.bf16.msra.mxu1 %v703_v45  ;;  %735 = vmatprep.subr.bf16.mxu0 %v924_v0 }
 0x1c4   :  { %705 = vmatprep.subr.bf16.mxu1 %v924_v0 }
 0x1c6   :  { %737 = vmatpush3.bf16.msra.mxu0 %v736_v20 }
 0x1c7   :  { %707 = vmatpush3.bf16.msra.mxu1 %v706_v48 }
 0x1c8   :  { %708 = vmatprep.subr.bf16.mxu1 %v924_v0 }
 0x1cb   :  { %710 = vmatpush3.bf16.msra.mxu1 %v709_v51 }
 0x1cc   :  { %711 = vmatprep.subr.bf16.mxu1 %v924_v0 }
 0x1cf   :  { %713 = vmatpush3.bf16.msra.mxu1 %v712_v54 }
 0x285   :  { %v275_v14 = vpop.f32.mrb[0].mxu1 }
 0x286   :  { %v276_v15 = vadd.f32 %v529_v13, %v275_v14  ;;  %v604_v16 = vpop.f32.mrb[1].mxu1 }
 0x288   :  { %v279_v17 = vmax.f32 %v276_v15, 0.0 }
 0x28a   :  { %638 = vmatmul.mubr.f32.vlgmr.msra.gmra.mrb[2].mxu1 %v279_v17 }
 0x35d   :  { %v369_v22 = vpop.f32.mrb[2].mxu1 }
 0x35e   :  { %v370_v23 = vadd.f32 %v531_v21, %v369_v22  ;;  %v639_v0 = vpop.f32.mrb[3].mxu1 }
 0x360   :  { %v373_v25 = vmax.f32 %v370_v23, 0.0 }
 0x362   :  { %673 = vmatmul.mubr.f32.vlgmr.msra.gmra.mrb[2].mxu0 %v373_v25 }
 0x363   :  { %874 = shalt.err (!%p871_p2)
}
 0x364   :  { %s875_s20 = scalar_lea.hbm %s1135_s9, 32 }
 0x365   :  { %p876_p3 = scmp.ne.s32.totalorder %s1135_s9, %s875_s20  ;;  %p879_p4 = scmp.lt.u32.totalorder %s875_s20, %s1135_s9 }
 0x367   :  { %p881_p5 = pnand %p879_p4, %p876_p3 }
 0x369   :  { %884 = shalt.err (!%p881_p5)
}
 0x36a   :  { %505 = dma.vmem_to_hbm [thread:$0]  %s503_s4, 32, %s1135_s9, [#allocation4]   ;;  %v532_v26 = vld [vmem:[%s1134_s8] ss:$0 sm:$0xff]  ;;  %vm492_vm5 = vcmask 1041664   ;;  %vm493_vm6 = vcmask 257026  }
 0x36b   :  { %s930_s29 = smov 32   ;;  %s931_s11 = smov [#allocation12]   ;;  %vm494_vm7 = vmor %vm493_vm6, %vm492_vm5 }
 0x36c   :  { %s512_s5 = sshll.u32 %s931_s11, 4  ;;  %s513_s5 = int_to_ptr.vmem [resolvable:$true] %s512_s5 }
 0x36d   :  { %s885_s9 = scalar_lea.vmem %s513_s5, 64  ;;  %p890_p7 = scmp.lt.s32.totalorder %s513_s5, %s513_s5 }
 0x36e   :  { %p886_p6 = scmp.ne.s32.totalorder %s513_s5, %s885_s9  ;;  %p891_p8 = scmp.lt.s32.totalorder %s885_s9, %s885_s9 }
 0x370   :  { %p892_p9 = por %p891_p8, %p890_p7 }
 0x372   :  { %p893_p10 = pnand %p892_p9, %p886_p6 }
 0x435   :  { %v463_v27 = vpop.f32.mrb[2].mxu0 }
 0x436   :  { %v464_v28 = vadd.f32 %v532_v26, %v463_v27  ;;  %v674_v29 = vpop.f32.mrb[3].mxu0 }
 0x438   :  { %v486_v30 = vrot.slane %v464_v28, %v1072_v24 }
 0x43a   :  { %487 = vrot.lane.b32.xlu0 %v486_v30, %s930_s29 }
 0x4ac   :  { %v488_v31 = vpop.permute.xlu0 %487 }
 0x4ad   :  { %v489_v32 = vrot.slane %v488_v31, 6 }
 0x4af   :  { %v490_v33 = vsel %vm206_vm3, %v489_v32, %v488_v31 }
 0x4b0   :  { %495 = vst.msk [vmem:[#allocation12] sm:$0xf] %vm494_vm7, %v490_v33 }
 0x4b1   :  { %896 = shalt.err (!%p893_p10)
}
 0x4b2   :  { %s897_s12 = scalar_lea.hbm %s1136_s10, 64 }
 0x4b3   :  { %p898_p11 = scmp.ne.s32.totalorder %s1136_s10, %s897_s12  ;;  %p901_p12 = scmp.lt.u32.totalorder %s897_s12, %s1136_s10 }
 0x4b5   :  { %p903_p13 = pnand %p901_p12, %p898_p11 }
 0x4b7   :  { %906 = shalt.err (!%p903_p13)
}
 0x4b8   :  { %515 = dma.vmem_to_hbm [thread:$0]  %s513_s5, 64, %s1136_s10, [#allocation13]  }
 0x4b9   :  { %913 = dma.done.wait [#allocation4], 32  }
 0x4ba   :  { %914 = vsyncadd [#allocation4], 4294967264 }
 0x4bb   :  { %915 = dma.done.wait [#allocation13], 64  }
 0x4bc   :  { %916 = vsyncadd [#allocation13], 4294967232 }
 0x4bd   :  { %522 = vsyncpa [#allocation3], 1 }
 0x4be   :  { %523 = vsyncpa [#allocation6], 1 }
 0x4bf   :  { %524 = vsyncpa [#allocation9], 1 }
 0x4c0   :  { %525 = vsyncpa [#allocation4], 1 }
 0x4c1   :  { %526 = vsyncpa [#allocation13], 1 }

</bundles_post_ra>
